<compile_context>
chip_gen: v7x
topology: tpu7x:2x2x1
jax: 0.10.0
libtpu: 0.0.40
codegen_flags: <defaults>
</compile_context>

<pallas_src>
import jax
import jax.numpy as jnp
from jax.experimental import pallas as pl
from jax.experimental.pallas import tpu as pltpu

# MXU operand / inter-layer activation dtype.  Accumulator stays float32.
MATMUL_INPUT_DTYPE = jnp.bfloat16

_VMEM_WS_BUDGET = 32 * 1024 * 1024     # target double-buffered working set
_VMEM_LIMIT_BYTES = 48 * 1024 * 1024   # < v7x 64 MiB physical; > default scoped


# ------------------------------ small helpers -------------------------------

def _round_up(x, m):
    return ((x + m - 1) // m) * m


def _pad_to(x, rows, cols):
    r, c = x.shape
    if r == rows and c == cols:
        return x
    return jnp.pad(x, ((0, rows - r), (0, cols - c)))


def _pad_cast(x, rows, cols, dtype):
    return _pad_to(x, rows, cols).astype(dtype)


# ------------------------------ Pallas kernels -------------------------------

def _mm_kernel(a_ref, b_ref, o_ref, acc_ref):
    @pl.when(pl.program_id(2) == 0)
    def _():
        acc_ref[...] = jnp.zeros_like(acc_ref)
    acc_ref[...] += jnp.dot(a_ref[...], b_ref[...],
                            preferred_element_type=jnp.float32)

    @pl.when(pl.program_id(2) == pl.num_programs(2) - 1)
    def _():
        o_ref[...] = acc_ref[...].astype(o_ref.dtype)


def _mm_mul_kernel(a_ref, b_ref, d_ref, o_ref, acc_ref):
    """Matmul with a fused f32 elementwise epilogue multiply (DualReLU's d*x)."""
    @pl.when(pl.program_id(2) == 0)
    def _():
        acc_ref[...] = jnp.zeros_like(acc_ref)
    acc_ref[...] += jnp.dot(a_ref[...], b_ref[...],
                            preferred_element_type=jnp.float32)

    @pl.when(pl.program_id(2) == pl.num_programs(2) - 1)
    def _():
        o_ref[...] = (acc_ref[...] * d_ref[...].astype(jnp.float32)
                      ).astype(o_ref.dtype)


def _mul_kernel(a_ref, b_ref, o_ref):
    o_ref[...] = (a_ref[...] * b_ref[...]).astype(o_ref.dtype)


# ----------------------------- tile selection --------------------------------

def _mm_vmem_bytes(tm, tn, tk, has_d):
    e = jnp.dtype(MATMUL_INPUT_DTYPE).itemsize
    b = 2 * (tm * tk + tk * tn) * e        # double-buffered A / B input tiles
    b += 2 * tm * tn * e                   # double-buffered output tile
    b += tm * tn * 4                       # f32 accumulator scratch
    if has_d:
        b += 2 * tm * tn * 4               # double-buffered f32 d tile
    return b


def _select_tiles(M, Kp, Np, has_d):
    # M tile: never collapse below 128 for large M; small M = one 8-aligned block.
    if M >= 512:
        tm = 256
    elif M >= 128:
        tm = 128
    else:
        tm = max(8, _round_up(M, 8))
    Mp = _round_up(M, tm)

    # N tile: biggest divisor of Np that fits the budget.
    tn = 128
    for cand in (512, 256, 128):
        if Np % cand == 0 and _mm_vmem_bytes(tm, cand, 128, has_d) <= _VMEM_WS_BUDGET:
            tn = cand
            break
    # v7x megacore: keep >= 2 blocks on a 'parallel' axis when possible.
    if Mp // tm == 1 and Np // tn < 2:
        for cand in (256, 128):
            if cand < tn and Np % cand == 0:
                tn = cand
                break

    # K tile: biggest divisor of Kp that fits the budget.
    tk = 128
    for cand in (2048, 1024, 512, 256, 128):
        if Kp % cand == 0 and _mm_vmem_bytes(tm, tn, cand, has_d) <= _VMEM_WS_BUDGET:
            tk = cand
            break
    return tm, tn, tk, Mp


# ----------------------------- matmul wrapper ---------------------------------

def pallas_matmul(a, b, d=None, out_dtype=None):
    """(a @ b) [* d], tiled / software-pipelined on the MXU.

    a: (M, K); b: (Kb, N) with Kb >= K (rows K..Kb of b must be zero padding);
    d: optional (>=Mp, >=Np) f32 epilogue multiplier whose pad region is zero.
    Returns the PADDED (Mp, Np) result; padded rows/cols are exactly zero
    (a, b, d are zero-padded), so the slab can feed the next fused layer.
    """
    M, K = a.shape
    Kb, N = b.shape
    if out_dtype is None:
        out_dtype = MATMUL_INPUT_DTYPE

    Kp = _round_up(max(K, Kb), 128)
    Np = _round_up(N, 128)
    tm, tn, tk, Mp = _select_tiles(M, Kp, Np, d is not None)

    a = _pad_cast(a, Mp, Kp, MATMUL_INPUT_DTYPE)
    b = _pad_cast(b, Kp, Np, MATMUL_INPUT_DTYPE)

    grid = (Mp // tm, Np // tn, Kp // tk)
    a_spec = pl.BlockSpec((tm, tk), lambda i, j, k: (i, k))
    b_spec = pl.BlockSpec((tk, tn), lambda i, j, k: (k, j))
    o_spec = pl.BlockSpec((tm, tn), lambda i, j, k: (i, j))
    scratch = [pltpu.VMEM((tm, tn), jnp.float32)]
    params = pltpu.CompilerParams(
        dimension_semantics=("parallel", "parallel", "arbitrary"),
        vmem_limit_bytes=_VMEM_LIMIT_BYTES)

    in_bytes = jnp.dtype(MATMUL_INPUT_DTYPE).itemsize
    bytes_accessed = (Mp * Kp + Kp * Np) * in_bytes + Mp * Np * jnp.dtype(out_dtype).itemsize
    if d is not None:
        bytes_accessed += Mp * Np * 4
    cost = pl.CostEstimate(flops=2 * Mp * Np * Kp, transcendentals=0,
                           bytes_accessed=int(bytes_accessed))

    if d is None:
        return pl.pallas_call(
            _mm_kernel,
            out_shape=jax.ShapeDtypeStruct((Mp, Np), out_dtype),
            grid=grid,
            in_specs=[a_spec, b_spec],
            out_specs=o_spec,
            scratch_shapes=scratch,
            compiler_params=params,
            cost_estimate=cost,
        )(a, b)

    # d may be pre-padded LARGER than (Mp, Np); blocks index absolute coords so
    # extra rows/cols are simply never read.  Pad (with zeros!) only if too small.
    dr, dc = d.shape
    if dr < Mp or dc < Np:
        d = _pad_to(d, max(dr, Mp), max(dc, Np))
    d = d.astype(jnp.float32)
    d_spec = pl.BlockSpec((tm, tn), lambda i, j, k: (i, j))
    return pl.pallas_call(
        _mm_mul_kernel,
        out_shape=jax.ShapeDtypeStruct((Mp, Np), out_dtype),
        grid=grid,
        in_specs=[a_spec, b_spec, d_spec],
        out_specs=o_spec,
        scratch_shapes=scratch,
        compiler_params=params,
        cost_estimate=cost,
    )(a, b, d)


# ------------------------- elementwise multiply paths -------------------------

def pallas_mul(a, b):
    """Elementwise a * b, same shapes.  Row-tiled + double-buffered (fallback
    path only; the hot path fuses the multiply into the matmul epilogue)."""
    assert a.shape == b.shape
    shape = b.shape
    if a.ndim == 1:
        a2, b2 = a.reshape(1, -1), b.reshape(1, -1)
    else:
        a2, b2 = a.reshape(shape[0], -1), b.reshape(shape[0], -1)
    R, C = a2.shape
    itemsize = max(a2.dtype.itemsize, b2.dtype.itemsize)
    max_rows = max(8, (2 * 1024 * 1024) // max(1, C * itemsize))
    tr = R if R <= max_rows else (max_rows // 8) * 8
    out = pl.pallas_call(
        _mul_kernel,
        out_shape=jax.ShapeDtypeStruct((R, C), b.dtype),
        grid=(pl.cdiv(R, tr),),
        in_specs=[pl.BlockSpec((tr, C), lambda i: (i, 0)),
                  pl.BlockSpec((tr, C), lambda i: (i, 0))],
        out_specs=pl.BlockSpec((tr, C), lambda i: (i, 0)),
        compiler_params=pltpu.CompilerParams(
            dimension_semantics=("parallel",),
            vmem_limit_bytes=_VMEM_LIMIT_BYTES),
    )(a2, b2)
    return out.reshape(shape)


def pallas_bcast_mul(x, d):
    """x * d[:, None] where x: (N0, N1, *rest), d: (N0, *rest).  d is broadcast
    along axis 1 INSIDE the kernel (its block index is pinned to 0 there), so no
    broadcast copy of d is ever written to HBM."""
    N0, N1 = x.shape[0], x.shape[1]
    P = 1
    for s in x.shape[2:]:
        P *= s
    x3 = x.reshape(N0, N1, P)
    d3 = d.reshape(N0, 1, P)
    itemsize = max(x3.dtype.itemsize, d3.dtype.itemsize)
    max_rows = max(8, (2 * 1024 * 1024) // max(1, P * itemsize))
    tn1 = N1 if N1 <= max_rows else (max_rows // 8) * 8
    out = pl.pallas_call(
        _mul_kernel,
        out_shape=jax.ShapeDtypeStruct((N0, N1, P), x.dtype),
        grid=(N0, pl.cdiv(N1, tn1)),
        in_specs=[pl.BlockSpec((1, tn1, P), lambda i, j: (i, j, 0)),
                  pl.BlockSpec((1, 1, P), lambda i, j: (i, 0, 0))],
        out_specs=pl.BlockSpec((1, tn1, P), lambda i, j: (i, j, 0)),
        compiler_params=pltpu.CompilerParams(
            dimension_semantics=("parallel", "parallel"),
            vmem_limit_bytes=_VMEM_LIMIT_BYTES),
    )(x3, d3)
    return out.reshape(x.shape)


# ---------------------------- Dual layer objects -----------------------------

class DualLinear:
    def __init__(self, weight):
        self.out_features, self.in_features = weight.shape
        # Pre-transpose to (in, out), pre-pad K/N to 128 multiples and pre-cast
        # to the MXU dtype ONCE (no per-forward weight.T / pad / cast copies).
        self.w_kn = _pad_cast(weight.T,
                              _round_up(self.in_features, 128),
                              _round_up(self.out_features, 128),
                              MATMUL_INPUT_DTYPE)

    def affine_slab(self, slab, d_slab=None, out_dtype=None):
        kb = self.w_kn.shape[0]
        if slab.shape[1] > kb:          # incoming padded slab: keep Kb cols.
            # Contract: cols >= out_features of the producing layer are exact
            # zeros (zero-padded weights and d), so truncation is lossless.
            slab = slab[:, :kb]
        return pallas_matmul(slab, self.w_kn, d=d_slab, out_dtype=out_dtype)

    def affine(self, *xs):
        """Plain-array path (reference semantics): F.linear(x, W), no bias."""
        x = xs[-1]
        lead = x.shape[:-1]
        x2 = x.reshape(-1, x.shape[-1])
        out = self.affine_slab(x2, out_dtype=x.dtype)[: x2.shape[0], : self.out_features]
        return out.reshape(*lead, self.out_features)


class DualConv2d:
    def __init__(self, weight, stride=1, padding=0):
        self.Cout, self.Cin, self.KH, self.KW = weight.shape
        self.stride = stride
        self.padding = padding
        k = self.KH * self.KW * self.Cin
        # (Cout, Cin, KH, KW) -> (KH*KW*Cin, Cout), channels fastest, padded+cast once.
        wm = jnp.transpose(weight, (2, 3, 1, 0)).reshape(k, self.Cout)
        self.w_kn = _pad_cast(wm, _round_up(k, 128), _round_up(self.Cout, 128),
                              MATMUL_INPUT_DTYPE)

    def affine_nhwc(self, x_nhwc, d_slab=None, out_dtype=None):
        """x_nhwc: (B, H, W, >=Cin) channels-last slab (only first Cin cols used).
        Returns ((B, OH, OW, Np) padded slab, logical NCHW shape)."""
        B, H, W, _ = x_nhwc.shape
        s, p, KH, KW, C = self.stride, self.padding, self.KH, self.KW, self.Cin
        OH = (H + 2 * p - KH) // s + 1
        OW = (W + 2 * p - KW) // s + 1
        x = x_nhwc[..., :C].astype(MATMUL_INPUT_DTYPE)
        xp = jnp.pad(x, ((0, 0), (p, p), (p, p), (0, 0)))
        cols = [xp[:, i:i + s * OH:s, j:j + s * OW:s, :]
                for i in range(KH) for j in range(KW)]
        K = KH * KW * C
        Kp = self.w_kn.shape[0]
        if Kp > K:   # build the patch slab already K-padded: no extra pad copy.
            cols.append(jnp.zeros((B, OH, OW, Kp - K), MATMUL_INPUT_DTYPE))
        patches = jnp.concatenate(cols, axis=-1).reshape(B * OH * OW, Kp)
        out = pallas_matmul(patches, self.w_kn, d=d_slab, out_dtype=out_dtype)
        out = out[:B * OH * OW].reshape(B, OH, OW, out.shape[1])
        return out, (B, self.Cout, OH, OW)

    def affine(self, *xs):
        """Plain NCHW path (reference semantics), including 5-D unbatch/batch."""
        x = xs[-1]
        is5 = (x.ndim == 5)
        if is5:                                   # unbatch(x)
            n = x.shape[0]
            x = x.reshape(-1, *x.shape[2:])
        out_nhwc, (_, Cout, _, _) = self.affine_nhwc(
            jnp.transpose(x, (0, 2, 3, 1)), out_dtype=x.dtype)
        out = jnp.transpose(out_nhwc[..., :Cout], (0, 3, 1, 2))
        if is5:                                   # batch(out, n)
            out = out.reshape(n, -1, *out.shape[1:])
        return out


class DualReLU:
    def __init__(self, d):
        self.d = d                                # same shape as activations
        if d.ndim == 4:                           # (B, C, H, W)
            B, C, H, W = d.shape
            slab = jnp.transpose(d, (0, 2, 3, 1)).reshape(B * H * W, C)
        elif d.ndim == 2:
            slab = d
        else:
            slab = d.reshape(d.shape[0], -1)
        r, c = slab.shape
        # Pre-pad ONCE (zeros) to cover any (Mp <= round_up(r,256), Np) the
        # consuming fused matmul may use; stays f32 for the f32 epilogue multiply.
        # Zero padding keeps the "padded slab regions are exactly zero" contract.
        self.d_slab = _pad_to(slab.astype(jnp.float32),
                              _round_up(r, 256), _round_up(c, 128))

    def affine(self, *xs, I_ind=None):
        """Fallback (non-fused) path."""
        x = xs[-1]
        d = self.d
        needs_bcast = x.ndim > d.ndim
        if I_ind is not None:
            # TODO(synk): scalar-prefetch (PrefetchScalarGridSpec) row gather of d
            # inside the kernel would avoid this gathered HBM copy of d.
            d = d[I_ind[:, 0]]
        if needs_bcast:
            return pallas_bcast_mul(x, d)         # broadcast d inside the kernel
        return pallas_mul(d, x)


class DualDense:
    """Skip-connection sum of dual affine maps (not exercised in the demo)."""
    def __init__(self, duals):
        self.duals = list(duals)

    def affine(self, *xs):
        duals = self.duals[-min(len(xs), len(self.duals)):]
        return sum(W.affine(*xs[:i + 1])
                   for i, W in zip(range(-len(duals) + len(xs), len(xs)), duals)
                   if W is not None)


class DualSequential:
    def __init__(self, dual_layers):
        self.dual_layers = list(dual_layers)

    # -- fused fast path -------------------------------------------------------
    @staticmethod
    def _standalone_relu(l, data, kind):
        if kind == "nhwc":
            B, OH, OW, Cp = data.shape
            flat = data.reshape(B * OH * OW, Cp)
            return pallas_mul(l.d_slab[:flat.shape[0], :Cp], flat).reshape(B, OH, OW, Cp)
        return pallas_mul(l.d_slab[:data.shape[0], :data.shape[1]], data)

    def _forward_fused(self, x, layers, nhwc):
        if nhwc:
            B, C, H, W = x.shape
            data = jnp.transpose(x, (0, 2, 3, 1))     # single NCHW -> NHWC
            logical = (B, C, H, W)
        else:
            data = x
            logical = x.shape
        i = 0
        while i < len(layers):
            l = layers[i]
            d_slab, step = None, 1
            if (isinstance(l, (DualConv2d, DualLinear)) and i + 1 < len(layers)
                    and isinstance(layers[i + 1], DualReLU)):
                d_slab, step = layers[i + 1].d_slab, 2      # fuse d*x into epilogue
            if isinstance(l, DualConv2d):
                data, logical = l.affine_nhwc(data, d_slab=d_slab)
            elif isinstance(l, DualLinear):
                data = l.affine_slab(data, d_slab=d_slab)
                logical = (logical[0], l.out_features)
            else:                                           # standalone DualReLU
                data = self._standalone_relu(l, data, "nhwc" if nhwc else "mat")
            i += step
        if nhwc:
            _, Cout, _, _ = logical
            # single NHWC -> NCHW transpose; up-cast fuses with it in XLA.
            return jnp.transpose(data[..., :Cout], (0, 3, 1, 2)).astype(x.dtype)
        M, F = logical
        return data[:M, :F].astype(x.dtype)

    # -- forward ---------------------------------------------------------------
    def forward(self, x, I_ind=None):
        layers = self.dual_layers[1:]                # first dual layer is skipped
        conv_chain = (x.ndim == 4 and
                      all(isinstance(l, (DualConv2d, DualReLU)) for l in layers))
        mlp_chain = (x.ndim == 2 and
                     all(isinstance(l, (DualLinear, DualReLU)) for l in layers))
        if I_ind is None and (conv_chain or mlp_chain):
            return self._forward_fused(x, layers, nhwc=conv_chain)

        # General path (DualDense, I_ind, 5-D inputs, mixed layouts): original
        # per-layer semantics; each layer still runs its Pallas kernels.
        zs = [x]
        for l in layers:
            if isinstance(l, DualDense):
                zs.append(l.affine(*zs))
            elif isinstance(l, DualReLU):
                zs.append(l.affine(zs[-1], I_ind=I_ind))
            else:
                zs.append(l.affine(zs[-1]))
        return zs[-1]

    __call__ = forward


# ----------------------------------- demo ------------------------------------

if __name__ == "__main__":
    key = jax.random.PRNGKey(0)
    ks = jax.random.split(key, 10)
    f32 = jnp.float32
    TOL = 5e-2   # bf16 MXU operands / inter-layer slabs -> loosened deliberately

    # ---- conv chain: x (B=2, C=4, H=16, W=16), NCHW ----
    x = jax.random.normal(ks[0], (2, 4, 16, 16), f32)
    w0 = jax.random.normal(ks[1], (4, 4, 3, 3), f32) * 0.1   # layer 0 (skipped)
    w1 = jax.random.normal(ks[2], (8, 4, 3, 3), f32) * 0.1
    w2 = jax.random.normal(ks[3], (8, 8, 3, 3), f32) * 0.1
    d_conv = jax.random.uniform(ks[4], (2, 8, 16, 16), f32)

    conv_seq = DualSequential([
        DualConv2d(w0, stride=1, padding=1),      # skipped
        DualConv2d(w1, stride=1, padding=1),
        DualReLU(d_conv),
        DualConv2d(w2, stride=2, padding=1),
    ])
    out_conv = conv_seq(x)                        # (2, 8, 8, 8)

    def ref_conv(a, w, s, p):
        return jax.lax.conv_general_dilated(
            a, w, (s, s), [(p, p), (p, p)],
            dimension_numbers=("NCHW", "OIHW", "NCHW"))

    ref_c = ref_conv(ref_conv(x, w1, 1, 1) * d_conv, w2, 2, 1)
    assert out_conv.shape == (2, 8, 8, 8)
    assert jnp.allclose(out_conv, ref_c, atol=TOL, rtol=TOL)

    # ---- MLP chain: x (B=2, hidden=32) ----
    xm = jax.random.normal(ks[5], (2, 32), f32)
    W1 = jax.random.normal(ks[6], (64, 32), f32) * 0.1
    W2 = jax.random.normal(ks[7], (16, 64), f32) * 0.1
    d_mlp = jax.random.uniform(ks[8], (2, 64), f32)

    mlp_seq = DualSequential([
        DualLinear(jnp.eye(32, dtype=f32)),       # skipped
        DualLinear(W1),
        DualReLU(d_mlp),
        DualLinear(W2),
    ])
    out_mlp = mlp_seq(xm)                         # (2, 16)
    ref_m = ((xm @ W1.T) * d_mlp) @ W2.T
    assert out_mlp.shape == (2, 16)
    assert jnp.allclose(out_mlp, ref_m, atol=TOL, rtol=TOL)

    # ---- non-fused conv fallback path (reference semantics) ----
    out_ref_path = DualSequential([
        DualConv2d(w0, stride=1, padding=1),
        DualConv2d(w1, stride=1, padding=1),
    ]).forward(x)
    assert jnp.allclose(out_ref_path, ref_conv(x, w1, 1, 1), atol=TOL, rtol=TOL)

    # ---- standalone DualReLU fallback (tiled pallas_mul, f32 exact) ----
    z = jax.random.normal(ks[9], (2, 8, 16, 16), f32)
    out_relu = DualReLU(d_conv).affine(z)
    assert jnp.allclose(out_relu, d_conv * z, atol=1e-6, rtol=1e-6)

    jax.block_until_ready((out_conv, out_mlp, out_ref_path, out_relu))
    print("KERNEL_OK")
</pallas_src>

<mosaic_0001>
module attributes {stable_mosaic.version = 11 : i64} {
  func.func @_mm_mul_kernel(%arg0: i32, %arg1: i32, %arg2: i32, %arg3: memref<256x128xbf16, #tpu.memory_space<vmem>>, %arg4: memref<128x128xbf16, #tpu.memory_space<vmem>>, %arg5: memref<256x128xf32, #tpu.memory_space<vmem>>, %arg6: memref<256x128xbf16, #tpu.memory_space<vmem>>, %arg7: memref<256x128xf32, #tpu.memory_space<vmem>>) attributes {dimension_semantics = [#tpu.dimension_semantics<parallel>, #tpu.dimension_semantics<parallel>, #tpu.dimension_semantics<arbitrary>], iteration_bounds = array<i64: 2, 1, 1>, scalar_prefetch = 0 : i64, scratch_operands = 1 : i64, tpu.core_type = #tpu.core_type<tc>, window_params = [{transform_indices = @transform_0, window_bounds = array<i64: 256, 128>}, {transform_indices = @transform_1, window_bounds = array<i64: 128, 128>}, {transform_indices = @transform_2, window_bounds = array<i64: 256, 128>}, {transform_indices = @transform_3, window_bounds = array<i64: 256, 128>}]} {
    %c0_i32 = arith.constant 0 : i32
    %0 = arith.cmpi eq, %arg2, %c0_i32 : i32
    %1 = arith.extui %0 : i1 to i32
    %c0_i32_0 = arith.constant 0 : i32
    %2 = arith.cmpi ne, %1, %c0_i32_0 : i32
    scf.if %2 {
      %cst_10 = arith.constant 0.000000e+00 : f32
      %12 = vector.broadcast %cst_10 : f32 to vector<256x128xf32>
      %c0_11 = arith.constant 0 : index
      %c0_12 = arith.constant 0 : index
      %13 = vector.load %arg7[%c0_11, %c0_12] : memref<256x128xf32, #tpu.memory_space<vmem>>, vector<256x128xf32>
      tpu.vector_store %arg7[%c0_11, %c0_12], %12 {strides = array<i32>} : memref<256x128xf32, #tpu.memory_space<vmem>>, vector<256x128xf32>,
    } else {
    }
    %c0 = arith.constant 0 : index
    %c0_1 = arith.constant 0 : index
    %3 = vector.load %arg7[%c0, %c0_1] : memref<256x128xf32, #tpu.memory_space<vmem>>, vector<256x128xf32>
    %c0_2 = arith.constant 0 : index
    %c0_3 = arith.constant 0 : index
    %4 = vector.load %arg3[%c0_2, %c0_3] : memref<256x128xbf16, #tpu.memory_space<vmem>>, vector<256x128xbf16>
    %c0_4 = arith.constant 0 : index
    %c0_5 = arith.constant 0 : index
    %5 = vector.load %arg4[%c0_4, %c0_5] : memref<128x128xbf16, #tpu.memory_space<vmem>>, vector<128x128xbf16>
    %cst = arith.constant dense<0.000000e+00> : vector<256x128xf32>
    %6 = tpu.matmul %4, %5, %cst {dimension_numbers = #tpu.dot_dimension_numbers<[1], [0], [0], [1], [0, 0, 1, 1], [], []>} : vector<256x128xbf16>, vector<128x128xbf16>, vector<256x128xf32> -> vector<256x128xf32>
    %7 = arith.addf %3, %6 : vector<256x128xf32>
    %c0_6 = arith.constant 0 : index
    %c0_7 = arith.constant 0 : index
    %8 = vector.load %arg7[%c0_6, %c0_7] : memref<256x128xf32, #tpu.memory_space<vmem>>, vector<256x128xf32>
    tpu.vector_store %arg7[%c0_6, %c0_7], %7 {strides = array<i32>} : memref<256x128xf32, #tpu.memory_space<vmem>>, vector<256x128xf32>,
    %c0_i32_8 = arith.constant 0 : i32
    %9 = arith.cmpi eq, %arg2, %c0_i32_8 : i32
    %10 = arith.extui %9 : i1 to i32
    %c0_i32_9 = arith.constant 0 : i32
    %11 = arith.cmpi ne, %10, %c0_i32_9 : i32
    scf.if %11 {
      %c0_10 = arith.constant 0 : index
      %c0_11 = arith.constant 0 : index
      %12 = vector.load %arg7[%c0_10, %c0_11] : memref<256x128xf32, #tpu.memory_space<vmem>>, vector<256x128xf32>
      %c0_12 = arith.constant 0 : index
      %c0_13 = arith.constant 0 : index
      %13 = vector.load %arg5[%c0_12, %c0_13] : memref<256x128xf32, #tpu.memory_space<vmem>>, vector<256x128xf32>
      %14 = arith.mulf %12, %13 : vector<256x128xf32>
      %15 = arith.truncf %14 : vector<256x128xf32> to vector<256x128xbf16>
      %c0_14 = arith.constant 0 : index
      %c0_15 = arith.constant 0 : index
      %16 = vector.load %arg6[%c0_14, %c0_15] : memref<256x128xbf16, #tpu.memory_space<vmem>>, vector<256x128xbf16>
      tpu.vector_store %arg6[%c0_14, %c0_15], %15 {strides = array<i32>} : memref<256x128xbf16, #tpu.memory_space<vmem>>, vector<256x128xbf16>,
    } else {
    }
    return
  }
  func.func @transform_0(%arg0: i32, %arg1: i32, %arg2: i32) -> (i32, i32) {
    %c0_i32 = arith.constant 0 : i32
    return %arg0, %arg2 : i32, i32
  }
  func.func @transform_1(%arg0: i32, %arg1: i32, %arg2: i32) -> (i32, i32) {
    %c0_i32 = arith.constant 0 : i32
    return %arg2, %arg1 : i32, i32
  }
  func.func @transform_2(%arg0: i32, %arg1: i32, %arg2: i32) -> (i32, i32) {
    %c0_i32 = arith.constant 0 : i32
    return %arg0, %arg1 : i32, i32
  }
  func.func @transform_3(%arg0: i32, %arg1: i32, %arg2: i32) -> (i32, i32) {
    %c0_i32 = arith.constant 0 : i32
    return %arg0, %arg1 : i32, i32
  }
}

</mosaic_0001>

<bundles_post_ra>
// kernel: tpu_custom_call.1
= control target key start
LH: loop header
LB: loop body
LE: loop exit
PB: predicated region body
PF: predicated region fallthrough
CT: control target
= control target key end

     0   :  { %s2128_s0 = inlined_call_operand.hbm [shape: bf16[512,128], index: 0, kind: input, shape index: {}]   ;;  %s2129_s1 = inlined_call_operand.hbm [shape: bf16[128,128], index: 1, kind: input, shape index: {}]   ;;  %s2130_s2 = inlined_call_operand.hbm [shape: f32[512,128], index: 2, kind: input, shape index: {}]   ;;  %s2131_s3 = inlined_call_operand.hbm [shape: bf16[512,128], index: 3, kind: output, shape index: {}]  }
   0x1   :  { %2138 = sst [smem:[#allocation14_spill]] %s2128_s0 }
   0x2   :  { %2139 = sst [smem:[#allocation15_spill]] %s2130_s2 }
   0x3   :  { %8 = vsyncpa [#allocation4], 0 }
   0x4   :  { %10 = vsyncpa [#allocation4 + $0x1], 0 }
   0x5   :  { %11 = vsyncpa [#allocation7], 0 }
   0x6   :  { %12 = vsyncpa [#allocation5], 0 }
   0x7   :  { %14 = vsyncpa [#allocation5 + $0x1], 0  ;;  %s1780_s12 = smov 0   ;;  %s1782_s13 = smov 0  }
   0x8   :  { %s1784_s14 = smov 0   ;;  %s1786_s15 = smov 0  }
   0x9   :  { %s1788_s16 = smov 0   ;;  %s1790_s17 = smov 0  }
   0xa LB: > { %s39_s18 = sadd.s32 1, %s1744_s16  ;;  %s48_s19 = sadd.s32 1, %s1736_s14  ;;  %s1748_s17 = sphi %s1790_s17, %s20_s17   ;;  %s1744_s16 = sphi %s1788_s16, %s2162_s16   ;;  %s1740_s15 = sphi %s1786_s15, %s2161_s15   ;;  %s1736_s14 = sphi %s1784_s14, %s2160_s14   ;;  %s1732_s13 = sphi %s1782_s13, %s2159_s13   ;;  %s1728_s12 = sphi %s1780_s12, %s2158_s12  }
   0xb   : > { %p41_p0 = scmp.ge.s32.totalorder %s39_s18, 2  ;;  %p55_p1 = scmp.ne.s32.totalorder %s1736_s14, %s1732_s13 }
   0xc   : > { %p56_p2 = scmp.eq.s32.totalorder %s1748_s17, 0  ;;  %p1488_p6 = scmp.lt.s32.totalorder %s1748_s17, 2 }
   0xd   : > { %s2164_s18 = smov (%p41_p0, %s39_s18), 0  ;;  %s186_s22 = sand.u32 1, %s1748_s17  }
   0xe   : > { %p1820_p3 = por %p56_p2, %p55_p1  ;;  %s43_s21 = ssub.s32 %s1744_s16, %s2164_s18 }
   0xf   : > { %p46_p5 = scmp.eq.s32.totalorder %s43_s21, 0  ;;  %s188_s23 = sand.u32 1, %s1736_s14  }
  0x10   : > { %s1172_s25 = sshll.u32 %s188_s23, 7  ;;  %s1244_s26 = sshll.u32 %s1744_s16, 11 }
  0x11   : > { %s1831_s24 = scalar_select %p46_p5, %s1736_s14, %s48_s19  }
  0x12   : > { %s2141_s0 = sld [smem:[#allocation14_spill]]  ;;  %s190_s30 = scalar_lea.vmem [#allocation3], %s1172_s25 }
  0x13   : > { %s198_s4 = sshll.u32 %s190_s30, 4  ;;  %p1843_p7 = pnand %p1488_p6, %p1820_p3  ;;  %s1839_s4 = int_to_ptr.vmem [resolvable:$true] %s198_s4 }
  0x14   : > { %s1847_s6 = sshll.u32 %s188_s23, 8  ;;  %s1849_s7 = scalar_lea.sflag [#allocation4], %s186_s22 }
  0x15   : > { %p1572_p9 = pneg %p1843_p7 }
  0x18   : > { %s1837_s29 = scalar_lea.hbm %s2141_s0, %s1244_s26  ;;  %s1575_s11 = scalar_lea.hbm %s2141_s0, 4096 }
  0x19   : > { %s1570_s8 = scalar_lea.hbm %s1837_s29, 2048  ;;  %p1576_p12 = scmp.lt.u32.totalorder %s1837_s29, %s2141_s0 }
  0x1a   : > { %p1571_p8 = scmp.ne.s32.totalorder %s1837_s29, %s1570_s8  ;;  %p1577_p13 = scmp.lt.u32.totalorder %s1575_s11, %s1570_s8 }
  0x1b   : > { %p1579_p2 = scmp.lt.u32.totalorder %s1570_s8, %s1837_s29 }
  0x1c   : > { %p1573_p10 = pnand %p1572_p9, %p1571_p8  ;;  %p1578_p0 = por %p1577_p13, %p1576_p12 }
  0x1e   : > { %p1574_p11 = pneg %p1573_p10  ;;  %p1580_p3 = por %p1579_p2, %p1578_p0 }
  0x20   : > { %p1581_p5 = pnand %p1580_p3, %p1574_p11 }
  0x22   : > { %1584 = shalt.err (!%p1581_p5)
}
  0x23   : > { %s1585_s21 = scalar_lea.vmem %s1839_s4, 2048  ;;  %s1750_s22 = smov [#allocation3]  }
  0x24   : > { %p1586_p6 = scmp.ne.s32.totalorder %s1839_s4, %s1585_s21  ;;  %s1590_s23 = sshll.u32 %s1750_s22, 4  ;;  %s1591_s23 = int_to_ptr.vmem [resolvable:$false] %s1590_s23 }
  0x25   : > { %s1592_s25 = scalar_lea.vmem %s1591_s23, 4096  ;;  %p1593_p4 = scmp.lt.s32.totalorder %s1839_s4, %s1591_s23 }
  0x26   : > { %p1588_p8 = pnand %p1586_p6, %p1572_p9  ;;  %p1594_p12 = scmp.lt.s32.totalorder %s1592_s25, %s1585_s21 }
  0x28   : > { %p1589_p10 = pneg %p1588_p8  ;;  %p1595_p13 = por %p1594_p12, %p1593_p4 }
  0x2a   : > { %p1596_p0 = pnand %p1595_p13, %p1589_p10 }
  0x2c   : > { %1599 = shalt.err (!%p1596_p0)
}
  0x2d   : > { %s2134_s26 = smov 64   ;;  %s2137_s27 = smov 4  }
  0x2e   : > { %1479 = dma.hbm_to_vmem [thread:$0]  (!%p1843_p7), %s1837_s29, 2048, %s1839_s4, %s1849_s7, %s2134_s26, %s2134_s26, %s2137_s27  }
  0x2f   : > { %s212_s28 = scalar_lea.vmem [#allocation8], %s1847_s6  ;;  %s1882_s8 = sadd.s32 4294967295, %s1748_s17  }
  0x30   : > { %s220_s30 = sshll.u32 %s212_s28, 4  ;;  %s1168_s9 = sadd.s32 4294967294, %s1748_s17   ;;  %s1920_s30 = int_to_ptr.vmem [resolvable:$true] %s220_s30 }
  0x31   : > { %p61_p4 = scmp.ne.s32.totalorder %s1732_s13, %s1728_s12  ;;  %p2132_p11 = scmp.eq.s32.totalorder %s1882_s8, 0 }
  0x32   : > { %p143_p2 = scmp.eq.s32.totalorder %s1882_s8, 1  ;;  %p149_p3 = scmp.eq.s32.totalorder %s1168_s9, 1 }
  0x33   : > { %p1891_p5 = por %p2132_p11, %p61_p4  ;;  %p1169_p6 = scmp.ge.s32.totalorder %s1748_s17, 1 }
  0x34   : > { %p1899_p8 = por %p143_p2, %p55_p1  ;;  %p1903_p10 = por %p149_p3, %p61_p4 }
  0x35   : > { %s2143_s10 = scalar_select %p1891_p5, 1, 0 }
  0x36   : > { %s2144_s29 = scalar_select %p1899_p8, 1, 0 }
  0x37   : > { %s2145_s4 = scalar_select %p1903_p10, 1, 0 }
  0x38   : > { %p156_p12 = scmp.lt.s32.totalorder %s1748_s17, 3  ;;  %s1245_s6 = sshll.u32 %s1744_s16, 12 }
  0x39   : > { %s1753_s19 = smov [#allocation6]   ;;  %s2147_s2 = sld [smem:[#allocation15_spill]] }
  0x3a   : > { %p1909_p13 = pnand %p1169_p6, %p156_p12  ;;  %s172_s20 = sshll.u32 %s1753_s19, 4  ;;  %s1922_s20 = int_to_ptr.vmem [resolvable:$true] %s172_s20 }
  0x3c   : > { %s2146_s11 = scalar_select %p1909_p13, 1, 0 }
  0x3d   : > { %p1472_p1 = pneg %p1909_p13 }
  0x3f   : > { %s1916_s23 = scalar_lea.hbm %s2147_s2, %s1245_s6  ;;  %p1926_p0 = pnand %p1472_p1, %p2132_p11 }
  0x40   : > { %s1600_s28 = scalar_lea.hbm %s1916_s23, 4096  ;;  %s1605_s19 = scalar_lea.hbm %s2147_s2, 8192 }
  0x41   : > { %p1601_p4 = scmp.ne.s32.totalorder %s1916_s23, %s1600_s28  ;;  %p1606_p6 = scmp.lt.u32.totalorder %s1916_s23, %s2147_s2 }
  0x42   : > { %p1607_p12 = scmp.lt.u32.totalorder %s1605_s19, %s1600_s28  ;;  %p1609_p1 = scmp.lt.u32.totalorder %s1600_s28, %s1916_s23 }
  0x43   : > { %p1603_p2 = pnand %p1601_p4, %p1572_p9 }
  0x44   : > { %p1608_p10 = por %p1607_p12, %p1606_p6 }
  0x45   : > { %p1604_p3 = pneg %p1603_p2 }
  0x46   : > { %p1610_p11 = por %p1609_p1, %p1608_p10 }
  0x48   : > { %p1611_p8 = pnand %p1610_p11, %p1604_p3 }
  0x4a   : > { %1614 = shalt.err (!%p1611_p8)
}
  0x4b   : > { %s1615_s26 = scalar_lea.vmem %s1920_s30, 4096  ;;  %s1754_s9 = smov [#allocation8]  }
  0x4c   : > { %p1616_p4 = scmp.ne.s32.totalorder %s1920_s30, %s1615_s26  ;;  %s1620_s6 = sshll.u32 %s1754_s9, 4  ;;  %s1621_s6 = int_to_ptr.vmem [resolvable:$false] %s1620_s6 }
  0x4d   : > { %s1622_s21 = scalar_lea.vmem %s1621_s6, 8192  ;;  %p1623_p13 = scmp.lt.s32.totalorder %s1920_s30, %s1621_s6 }
  0x4e   : > { %p1618_p2 = pnand %p1616_p4, %p1572_p9  ;;  %p1624_p6 = scmp.lt.s32.totalorder %s1622_s21, %s1615_s26 }
  0x50   : > { %p1619_p5 = pneg %p1618_p2  ;;  %p1625_p12 = por %p1624_p6, %p1623_p13 }
  0x52   : > { %p1626_p10 = pnand %p1625_p12, %p1619_p5 }
  0x54   : > { %1629 = shalt.err (!%p1626_p10)
}
  0x55   : > { %s1755_s28 = smov 128   ;;  %s1756_s19 = smov 8  }
  0x56   : > { %1482 = dma.hbm_to_vmem [thread:$0]  (!%p1843_p7), %s1916_s23, 4096, %s1920_s30, %s1849_s7, %s1755_s28, %s1755_s28, %s1756_s19  }
  0x57   : > { %s1630_s9 = scalar_lea.hbm %s2129_s1, 1024  ;;  %p1632_p11 = pneg %p1926_p0 }
  0x58   : > { %p1631_p9 = scmp.ne.s32.totalorder %s2129_s1, %s1630_s9  ;;  %p1637_p13 = scmp.lt.u32.totalorder %s1630_s9, %s2129_s1 }
  0x5a   : > { %p1633_p5 = pnand %p1632_p11, %p1631_p9 }
  0x5c   : > { %p1634_p8 = pneg %p1633_p5 }
  0x5e   : > { %p1639_p3 = pnand %p1637_p13, %p1634_p8 }
  0x60   : > { %1642 = shalt.err (!%p1639_p3)
}
  0x61   : > { %s1643_s5 = scalar_lea.vmem %s1922_s20, 1024  ;;  %p1651_p2 = scmp.lt.s32.totalorder %s1922_s20, %s1922_s20 }
  0x62   : > { %p1644_p7 = scmp.ne.s32.totalorder %s1922_s20, %s1643_s5  ;;  %p1652_p6 = scmp.lt.s32.totalorder %s1643_s5, %s1643_s5 }
  0x64   : > { %p1646_p1 = pnand %p1644_p7, %p1632_p11  ;;  %p1653_p12 = por %p1652_p6, %p1651_p2 }
  0x66   : > { %p1647_p4 = pneg %p1646_p1 }
  0x68   : > { %p1654_p10 = pnand %p1653_p12, %p1647_p4 }
  0x6a   : > { %1657 = shalt.err (!%p1654_p10)
}
  0x6b   : > { %s2149_s0 = smov 4   ;;  %s2150_s2 = smov 64  }
  0x6c   : > { %1475 = dma.hbm_to_vmem [thread:$0]  (!%p1926_p0), %s2129_s1, 1024, %s1922_s20, [#allocation7], %s2150_s2, %s2150_s2, %s2149_s0  }
  0x6d   : > { %p2151_p9 = scmp.ne.s32.totalorder %s2146_s11, 0 }
  0x6e   : > { %s234_s30 = sand.u32 (!%p2151_p9), 1, %s1882_s8   ;;  %s1982_s23 = sand.u32 (!%p2151_p9), 1, %s1732_s13  }
  0x6f   : > { %232 = sbr.rel (%p2151_p9) target bundleno = 416 (0x1a0), region = 32  ;;  %s1179_s25 = sshll.u32 (!%p2151_p9), %s1982_s23, 7 }
  0x70   : > { %s235_s21 = scalar_lea.sflag (!%p2151_p9), [#allocation4], %s234_s30  ;;  %s1987_s28 = scalar_lea.vmem (!%p2151_p9), [#allocation3], %s1179_s25 }
  0x71   : > { %p2152_p11 = scmp.ne.s32.totalorder (!%p2151_p9), %s2143_s10, 0 }
  0x76   : > { %1711 = dma.done.wait (%p2152_p11), %s235_s21, 2048  }
  0x77   : > { %1713 = vsyncadd (%p2152_p11), %s235_s21, 4294965248  ;;  %p2153_p0 = scmp.eq.s32.totalorder %s1882_s8, 0 }
  0x79   : > { %1715 = dma.done.wait (%p2153_p0), [#allocation7], 1024   ;;  %p2154_p5 = pmov %p2153_p0 }
  0x7a   : > { %s1181_s11 = sshll.u32 %s1982_s23, 8 }
  0x7b   : > { %1717 = vsyncadd (%p2154_p5), [#allocation7], 4294966272  ;;  %s1998_s20 = scalar_lea.vmem [#allocation8], %s1181_s11 }
  0x7c   : > { %1719 = dma.done.wait (%p2152_p11), %s235_s21, 4096  }
  0x7d   : > { %1721 = vsyncadd (%p2152_p11), %s235_s21, 4294963200  ;;  %v1546_v0 = vld [vmem:[#allocation6] sm:$0xff]   ;;  %v1547_v1 = vld [vmem:[#allocation6 + $0x8] sm:$0xff]   ;;  %s2030_s8 = scalar_lea.vmem [#allocation9], %s1179_s25  ;;  %s1278_s10 = sshll.u32 %s1740_s15, 11 }
  0x7e   : > { %1398 = vmatprep.subr.bf16.mxu0 %v1546_v0  ;;  %1446 = vmatprep.subr.bf16.mxu1 %v1546_v0  ;;  %v1548_v2 = vld [vmem:[#allocation6 + $0x10] sm:$0xff]   ;;  %v1549_v3 = vld [vmem:[#allocation6 + $0x18] sm:$0xff]   ;;  %v1554_v4 = vld [vmem:[%s1987_s28] sm:$0xff]   ;;  %s1043_s19 = sshll.u32 %s2030_s8, 4  ;;  %s2073_s9 = scalar_lea.hbm %s2131_s3, %s1278_s10  ;;  %s2075_s19 = int_to_ptr.vmem [resolvable:$true] %s1043_s19 }
  0x7f   : > { %1399 = vmatpush3.bf16.msra.mxu0 %v1546_v0  ;;  %1454 = vmatpush3.bf16.msra.mxu1 %v1546_v0  ;;  %v1555_v5 = vld [vmem:[%s1987_s28 + $0x40] sm:$0xff]   ;;  %v1551_v7 = vld [vmem:[#allocation6 + $0x28] sm:$0xff]   ;;  %v1552_v8 = vld [vmem:[#allocation6 + $0x30] sm:$0xff]   ;;  %s1029_s26 = scalar_lea.sflag [#allocation5], %s1982_s23  ;;  %s1658_s6 = scalar_lea.vmem %s2075_s19, 2048 }
  0x80   : > { %1400 = vmatprep.subr.bf16.mxu0 %v1547_v1  ;;  %1447 = vmatprep.subr.bf16.mxu1 %v1547_v1  ;;  %v1550_v6 = vld [vmem:[#allocation6 + $0x20] sm:$0xff]   ;;  %v1553_v9 = vld [vmem:[#allocation6 + $0x38] sm:$0xff]   ;;  %v1556_v10 = vld [vmem:[%s1987_s28 + $0x8] sm:$0xff]   ;;  %p1659_p8 = scmp.ne.s32.totalorder %s2075_s19, %s1658_s6  ;;  %p2155_p13 = scmp.ne.s32.totalorder %s2144_s29, 0 }
  0x81   : > { %1414 = vmatprep.mubr.bf16.mxu0 %v1554_v4  ;;  %1430 = vmatprep.mubr.bf16.mxu1 %v1555_v5  ;;  %v1557_v11 = vld [vmem:[%s1987_s28 + $0x48] sm:$0xff]   ;;  %v1558_v12 = vld [vmem:[%s1987_s28 + $0x10] sm:$0xff]   ;;  %v1560_v14 = vld [vmem:[%s1987_s28 + $0x18] sm:$0xff]   ;;  %s1757_s5 = smov [#allocation9]  }
  0x82   : > { %v1559_v13 = vld [vmem:[%s1987_s28 + $0x50] sm:$0xff]   ;;  %v1561_v15 = vld [vmem:[%s1987_s28 + $0x58] sm:$0xff]   ;;  %v1562_v16 = vld [vmem:[%s1987_s28 + $0x20] sm:$0xff]   ;;  %p1660_p3 = pnand %p1659_p8, %p2155_p13  ;;  %s1662_s0 = sshll.u32 %s1757_s5, 4  ;;  %s1663_s0 = int_to_ptr.vmem [resolvable:$false] %s1662_s0 }
  0x83   : > { %1401 = vmatpush3.bf16.msra.mxu0 %v1547_v1  ;;  %1455 = vmatpush3.bf16.msra.mxu1 %v1547_v1  ;;  %v1563_v17 = vld [vmem:[%s1987_s28 + $0x60] sm:$0xff]   ;;  %v1564_v18 = vld [vmem:[%s1987_s28 + $0x28] sm:$0xff]   ;;  %v1566_v20 = vld [vmem:[%s1987_s28 + $0x30] sm:$0xff]   ;;  %s1664_s2 = scalar_lea.vmem %s1663_s0, 4096  ;;  %p1665_p1 = scmp.lt.s32.totalorder %s2075_s19, %s1663_s0 }
  0x84   : > { %1402 = vmatprep.subr.bf16.mxu0 %v1548_v2  ;;  %1448 = vmatprep.subr.bf16.mxu1 %v1548_v2  ;;  %v1565_v19 = vld [vmem:[%s1987_s28 + $0x68] sm:$0xff]   ;;  %v1567_v21 = vld [vmem:[%s1987_s28 + $0x70] sm:$0xff]   ;;  %v1568_v22 = vld [vmem:[%s1987_s28 + $0x38] sm:$0xff]   ;;  %p1661_p7 = pneg %p1660_p3  ;;  %p1666_p4 = scmp.lt.s32.totalorder %s1664_s2, %s1658_s6 }
  0x85   : > { %v1569_v23 = vld [vmem:[%s1987_s28 + $0x78] sm:$0xff]   ;;  %v806_v24 = vld [vmem:[%s1998_s20 + $0x10] sm:$0xff]  ;;  %v804_v28 = vld [vmem:[%s1998_s20] sm:$0xff] }
  0x86   : > { %v822_v25 = vld [vmem:[%s1998_s20 + $0x90] sm:$0xff]  ;;  %v807_v29 = vld [vmem:[%s1998_s20 + $0x18] sm:$0xff]  ;;  %v820_v33 = vld [vmem:[%s1998_s20 + $0x80] sm:$0xff]  ;;  %p1667_p2 = por %p1666_p4, %p1665_p1 }
  0x87   : > { %1403 = vmatpush3.bf16.msra.mxu0 %v1548_v2  ;;  %1456 = vmatpush3.bf16.msra.mxu1 %v1548_v2  ;;  %v823_v30 = vld [vmem:[%s1998_s20 + $0x98] sm:$0xff]  ;;  %v805_v34 = vld [vmem:[%s1998_s20 + $0x8] sm:$0xff]  ;;  %v810_v52 = vld [vmem:[%s1998_s20 + $0x30] sm:$0xff] }
  0x88   : > { %1404 = vmatprep.subr.bf16.mxu0 %v1549_v3  ;;  %1449 = vmatprep.subr.bf16.mxu1 %v1549_v3  ;;  %v821_v35 = vld [vmem:[%s1998_s20 + $0x88] sm:$0xff]  ;;  %v826_v53 = vld [vmem:[%s1998_s20 + $0xb0] sm:$0xff]  ;;  %v808_v56 = vld [vmem:[%s1998_s20 + $0x20] sm:$0xff]  ;;  %p1668_p6 = pnand %p1667_p2, %p1661_p7 }
  0x89   : > { %v811_v57 = vld [vmem:[%s1998_s20 + $0x38] sm:$0xff]  ;;  %v824_v61 = vld [vmem:[%s1998_s20 + $0xa0] sm:$0xff]  ;;  %v809_v62 = vld [vmem:[%s1998_s20 + $0x28] sm:$0xff] }
  0x8a   : > { %v827_v58 = vld [vmem:[%s1998_s20 + $0xb8] sm:$0xff]  ;;  %v825_v63 = vld [vmem:[%s1998_s20 + $0xa8] sm:$0xff] }
  0x8b   : > { %1405 = vmatpush3.bf16.msra.mxu0 %v1549_v3  ;;  %1457 = vmatpush3.bf16.msra.mxu1 %v1549_v3 }
  0x8c   : > { %1406 = vmatprep.subr.bf16.mxu0 %v1550_v6  ;;  %1450 = vmatprep.subr.bf16.mxu1 %v1550_v6 }
  0x8f   : > { %1407 = vmatpush3.bf16.msra.mxu0 %v1550_v6  ;;  %1458 = vmatpush3.bf16.msra.mxu1 %v1550_v6 }
  0x90   : > { %1408 = vmatprep.subr.bf16.mxu0 %v1551_v7  ;;  %1451 = vmatprep.subr.bf16.mxu1 %v1551_v7 }
  0x93   : > { %1409 = vmatpush3.bf16.msra.mxu0 %v1551_v7  ;;  %1459 = vmatpush3.bf16.msra.mxu1 %v1551_v7 }
  0x94   : > { %1410 = vmatprep.subr.bf16.mxu0 %v1552_v8  ;;  %1452 = vmatprep.subr.bf16.mxu1 %v1552_v8 }
  0x97   : > { %1411 = vmatpush3.bf16.msra.mxu0 %v1552_v8  ;;  %1460 = vmatpush3.bf16.msra.mxu1 %v1552_v8 }
  0x98   : > { %1412 = vmatprep.subr.bf16.mxu0 %v1553_v9  ;;  %1453 = vmatprep.subr.bf16.mxu1 %v1553_v9 }
  0x9b   : > { %1413 = vmatpush3.bf16.msra.mxu0 %v1553_v9  ;;  %1461 = vmatpush3.bf16.msra.mxu1 %v1553_v9 }
  0x9e   : > { %1415 = vmatmul.mubr.bf16.vlgmr.msra.gmra.mrb[0].mxu0 %v1556_v10  ;;  %1431 = vmatmul.mubr.bf16.vlgmr.msra.gmra.mrb[0].mxu1 %v1557_v11 }
  0x9f   : > { %1418 = vmatprep.mubr.bf16.mxu0 %v1558_v12  ;;  %1434 = vmatprep.mubr.bf16.mxu1 %v1559_v13 }
  0xa6   : > { %1419 = vmatmul.mubr.bf16.gmra.mrb[4].mxu0 %v1560_v14  ;;  %1435 = vmatmul.mubr.bf16.gmra.mrb[4].mxu1 %v1561_v15 }
  0xa7   : > { %1422 = vmatprep.mubr.bf16.mxu0 %v1562_v16  ;;  %1438 = vmatprep.mubr.bf16.mxu1 %v1563_v17  ;;  %v814_v16 = vld [vmem:[%s1998_s20 + $0x50] sm:$0xff] }
  0xa8   : > { %v830_v17 = vld [vmem:[%s1998_s20 + $0xd0] sm:$0xff] }
  0xae   : > { %1423 = vmatmul.mubr.bf16.gmra.mrb[8].mxu0 %v1564_v18  ;;  %1439 = vmatmul.mubr.bf16.gmra.mrb[8].mxu1 %v1565_v19 }
  0xaf   : > { %1426 = vmatprep.mubr.bf16.mxu0 %v1566_v20  ;;  %1442 = vmatprep.mubr.bf16.mxu1 %v1567_v21  ;;  %v812_v20 = vld [vmem:[%s1998_s20 + $0x40] sm:$0xff]  ;;  %v815_v21 = vld [vmem:[%s1998_s20 + $0x58] sm:$0xff] }
  0xb6   : > { %1427 = vmatmul.mubr.bf16.gmra.mrb[12].mxu0 %v1568_v22  ;;  %1443 = vmatmul.mubr.bf16.gmra.mrb[12].mxu1 %v1569_v23  ;;  %v831_v22 = vld [vmem:[%s1998_s20 + $0xd8] sm:$0xff] }
 0x171   : > { %v1416_v26 = vpop.f32.mrb[0].mxu0  ;;  %v1432_v27 = vpop.f32.mrb[0].mxu1 }
 0x172   : > { %v578_v31 = vpop.f32.mrb[1].mxu0  ;;  %v642_v32 = vpop.f32.mrb[1].mxu1  ;;  %v838_v38 = vmul.f32 %v1416_v26, %v806_v24  ;;  %v854_v39 = vmul.f32 %v1432_v27, %v822_v25  ;;  %v828_v25 = vld [vmem:[%s1998_s20 + $0xc0] sm:$0xff]  ;;  %v813_v26 = vld [vmem:[%s1998_s20 + $0x48] sm:$0xff] }
 0x173   : > { %v1417_v36 = vpop.f32.mrb[2].mxu0  ;;  %v1433_v37 = vpop.f32.mrb[2].mxu1  ;;  %v836_v44 = vmul.f32 %v804_v28, %v578_v31  ;;  %v852_v45 = vmul.f32 %v820_v33, %v642_v32  ;;  %v829_v27 = vld [vmem:[%s1998_s20 + $0xc8] sm:$0xff] }
 0x174   : > { %v839_v40 = vmul.f32 %v1417_v36, %v807_v29  ;;  %v855_v41 = vmul.f32 %v1433_v37, %v823_v30  ;;  %v581_v42 = vpop.f32.mrb[3].mxu0  ;;  %v645_v43 = vpop.f32.mrb[3].mxu1 }
 0x175   : > { %v837_v46 = vmul.f32 %v805_v34, %v581_v42  ;;  %v853_v47 = vmul.f32 %v821_v35, %v645_v43 }
 0x176   : > { %v1287_v48 = vpack.c.bf16 %v839_v40, %v838_v38  ;;  %v1327_v49 = vpack.c.bf16 %v855_v41, %v854_v39 }
 0x177   : > { %v1282_v50 = vpack.c.bf16 %v837_v46, %v836_v44  ;;  %v1322_v51 = vpack.c.bf16 %v853_v47, %v852_v45  ;;  %v818_v44 = vld [vmem:[%s1998_s20 + $0x70] sm:$0xff] }
 0x178   : > { %1359 = vst [vmem:[%s2030_s8 + $0x8] sm:$0xff] %v1287_v48   ;;  %1367 = vst [vmem:[%s2030_s8 + $0x48] sm:$0xff] %v1327_v49   ;;  %v834_v45 = vld [vmem:[%s1998_s20 + $0xf0] sm:$0xff]  ;;  %v816_v48 = vld [vmem:[%s1998_s20 + $0x60] sm:$0xff] }
 0x179   : > { %1283 = vst [vmem:[%s2030_s8] sm:$0xff] %v1282_v50   ;;  %1366 = vst [vmem:[%s2030_s8 + $0x40] sm:$0xff] %v1322_v51   ;;  %v1420_v54 = vpop.f32.mrb[4].mxu0  ;;  %v1436_v55 = vpop.f32.mrb[4].mxu1  ;;  %v819_v49 = vld [vmem:[%s1998_s20 + $0x78] sm:$0xff] }
 0x17a   : > { %v594_v59 = vpop.f32.mrb[5].mxu0  ;;  %v658_v60 = vpop.f32.mrb[5].mxu1  ;;  %v842_v2 = vmul.f32 %v1420_v54, %v810_v52  ;;  %v858_v3 = vmul.f32 %v1436_v55, %v826_v53  ;;  %v835_v50 = vld [vmem:[%s1998_s20 + $0xf8] sm:$0xff]  ;;  %v832_v53 = vld [vmem:[%s1998_s20 + $0xe0] sm:$0xff]  ;;  %v817_v54 = vld [vmem:[%s1998_s20 + $0x68] sm:$0xff] }
 0x17b   : > { %v1421_v0 = vpop.f32.mrb[6].mxu0  ;;  %v1437_v1 = vpop.f32.mrb[6].mxu1  ;;  %v840_v8 = vmul.f32 %v808_v56, %v594_v59  ;;  %v856_v9 = vmul.f32 %v824_v61, %v658_v60  ;;  %v833_v55 = vld [vmem:[%s1998_s20 + $0xe8] sm:$0xff] }
 0x17c   : > { %v843_v4 = vmul.f32 %v1421_v0, %v811_v57  ;;  %v859_v5 = vmul.f32 %v1437_v1, %v827_v58  ;;  %v597_v6 = vpop.f32.mrb[7].mxu0  ;;  %v661_v7 = vpop.f32.mrb[7].mxu1 }
 0x17d   : > { %v841_v10 = vmul.f32 %v809_v62, %v597_v6  ;;  %v857_v11 = vmul.f32 %v825_v63, %v661_v7 }
 0x17e   : > { %v1297_v12 = vpack.c.bf16 %v843_v4, %v842_v2  ;;  %v1337_v13 = vpack.c.bf16 %v859_v5, %v858_v3 }
 0x17f   : > { %v1292_v14 = vpack.c.bf16 %v841_v10, %v840_v8  ;;  %v1332_v15 = vpack.c.bf16 %v857_v11, %v856_v9 }
 0x180   : > { %1361 = vst [vmem:[%s2030_s8 + $0x18] sm:$0xff] %v1297_v12   ;;  %1369 = vst [vmem:[%s2030_s8 + $0x58] sm:$0xff] %v1337_v13  }
 0x181   : > { %1360 = vst [vmem:[%s2030_s8 + $0x10] sm:$0xff] %v1292_v14   ;;  %1368 = vst [vmem:[%s2030_s8 + $0x50] sm:$0xff] %v1332_v15   ;;  %v1424_v18 = vpop.f32.mrb[8].mxu0  ;;  %v1440_v19 = vpop.f32.mrb[8].mxu1 }
 0x182   : > { %v610_v23 = vpop.f32.mrb[9].mxu0  ;;  %v674_v24 = vpop.f32.mrb[9].mxu1  ;;  %v846_v30 = vmul.f32 %v1424_v18, %v814_v16  ;;  %v862_v31 = vmul.f32 %v1440_v19, %v830_v17 }
 0x183   : > { %v1425_v28 = vpop.f32.mrb[10].mxu0  ;;  %v1441_v29 = vpop.f32.mrb[10].mxu1  ;;  %v844_v36 = vmul.f32 %v812_v20, %v610_v23  ;;  %v860_v37 = vmul.f32 %v828_v25, %v674_v24 }
 0x184   : > { %v847_v32 = vmul.f32 %v1425_v28, %v815_v21  ;;  %v863_v33 = vmul.f32 %v1441_v29, %v831_v22  ;;  %v613_v34 = vpop.f32.mrb[11].mxu0  ;;  %v677_v35 = vpop.f32.mrb[11].mxu1 }
 0x185   : > { %v845_v38 = vmul.f32 %v813_v26, %v613_v34  ;;  %v861_v39 = vmul.f32 %v829_v27, %v677_v35 }
 0x186   : > { %v1307_v40 = vpack.c.bf16 %v847_v32, %v846_v30  ;;  %v1347_v41 = vpack.c.bf16 %v863_v33, %v862_v31 }
 0x187   : > { %v1302_v42 = vpack.c.bf16 %v845_v38, %v844_v36  ;;  %v1342_v43 = vpack.c.bf16 %v861_v39, %v860_v37 }
 0x188   : > { %1363 = vst [vmem:[%s2030_s8 + $0x28] sm:$0xff] %v1307_v40   ;;  %1371 = vst [vmem:[%s2030_s8 + $0x68] sm:$0xff] %v1347_v41  }
 0x189   : > { %1362 = vst [vmem:[%s2030_s8 + $0x20] sm:$0xff] %v1302_v42   ;;  %1370 = vst [vmem:[%s2030_s8 + $0x60] sm:$0xff] %v1342_v43   ;;  %v1428_v46 = vpop.f32.mrb[12].mxu0  ;;  %v1444_v47 = vpop.f32.mrb[12].mxu1 }
 0x18a   : > { %v626_v51 = vpop.f32.mrb[13].mxu0  ;;  %v690_v52 = vpop.f32.mrb[13].mxu1  ;;  %v850_v58 = vmul.f32 %v1428_v46, %v818_v44  ;;  %v866_v59 = vmul.f32 %v1444_v47, %v834_v45 }
 0x18b   : > { %v1429_v56 = vpop.f32.mrb[14].mxu0  ;;  %v1445_v57 = vpop.f32.mrb[14].mxu1  ;;  %v848_v0 = vmul.f32 %v816_v48, %v626_v51  ;;  %v864_v1 = vmul.f32 %v832_v53, %v690_v52 }
 0x18c   : > { %v851_v60 = vmul.f32 %v1429_v56, %v819_v49  ;;  %v867_v61 = vmul.f32 %v1445_v57, %v835_v50  ;;  %v629_v62 = vpop.f32.mrb[15].mxu0  ;;  %v693_v63 = vpop.f32.mrb[15].mxu1 }
 0x18d   : > { %v849_v2 = vmul.f32 %v817_v54, %v629_v62  ;;  %v865_v3 = vmul.f32 %v833_v55, %v693_v63 }
 0x18e   : > { %v1317_v4 = vpack.c.bf16 %v851_v60, %v850_v58  ;;  %v1357_v5 = vpack.c.bf16 %v867_v61, %v866_v59 }
 0x18f   : > { %v1312_v6 = vpack.c.bf16 %v849_v2, %v848_v0  ;;  %v1352_v7 = vpack.c.bf16 %v865_v3, %v864_v1 }
 0x190   : > { %1365 = vst [vmem:[%s2030_s8 + $0x38] sm:$0xff] %v1317_v4   ;;  %1373 = vst [vmem:[%s2030_s8 + $0x78] sm:$0xff] %v1357_v5  }
 0x191   : > { %1364 = vst [vmem:[%s2030_s8 + $0x30] sm:$0xff] %v1312_v6   ;;  %1372 = vst [vmem:[%s2030_s8 + $0x70] sm:$0xff] %v1352_v7  }
 0x192   : > { %1671 = shalt.err (!%p1668_p6)
}
 0x193   : > { %s1672_s7 = scalar_lea.hbm %s2073_s9, 2048  ;;  %s1676_s25 = scalar_lea.hbm %s2131_s3, 4096 }
 0x194   : > { %p1673_p12 = scmp.ne.s32.totalorder %s2073_s9, %s1672_s7  ;;  %p1677_p11 = scmp.lt.u32.totalorder %s2073_s9, %s2131_s3 }
 0x195   : > { %p1678_p0 = scmp.lt.u32.totalorder %s1676_s25, %s1672_s7  ;;  %p1680_p8 = scmp.lt.u32.totalorder %s1672_s7, %s2073_s9 }
 0x196   : > { %p1674_p10 = pnand %p1673_p12, %p2155_p13 }
 0x197   : > { %p1679_p5 = por %p1678_p0, %p1677_p11 }
 0x198   : > { %p1675_p9 = pneg %p1674_p10 }
 0x199   : > { %p1681_p3 = por %p1680_p8, %p1679_p5 }
 0x19b   : > { %p1682_p7 = pnand %p1681_p3, %p1675_p9 }
 0x19d   : > { %1685 = shalt.err (!%p1682_p7)
}
 0x19e   : > { %s1758_s11 = smov 64   ;;  %s1759_s20 = smov 4  }
 0x19f   : > { %1470 = dma.vmem_to_hbm [thread:$0]  (%p2155_p13), %s2075_s19, 2048, %s2073_s9, %s1029_s26, %s1758_s11, %s1758_s11, %s1759_s20  }
 0x1a0 PF: > { %s1058_s8 = sand.u32 1, %s1728_s12   ;;  %p2156_p1 = scmp.ne.s32.totalorder %s2145_s4, 0 }
 0x1a1   : > { %p2157_p4 = scmp.ge.s32.totalorder %s1748_s17, 2  ;;  %s1059_s10 = scalar_lea.sflag [#allocation5], %s1058_s8 }
 0x1a3   : > { %p1484_p2 = pnand %p2157_p4, %p2156_p1 }
 0x1a5   : > { %1723 = dma.done.wait (!%p1484_p2), %s1059_s10, 2048  }
 0x1a6   : > { %1725 = vsyncadd (!%p1484_p2), %s1059_s10, 4294965248  ;;  %s20_s17 = sadd.s32 1, %s1748_s17   ;;  %s2158_s12 = smov %s1732_s13 }
 0x1a7   : > { %p17_p6 = scmp.ge.s32.totalorder %s20_s17, 4   ;;  %s2159_s13 = smov %s1736_s14 }
 0x1a8   : > { %s2160_s14 = smov %s1831_s24  ;;  %s2161_s15 = smov %s1744_s16 }
 0x1a9   : > { %s2162_s16 = smov %s2164_s18  ;;  %19 = sbr.rel (!%p17_p6) target bundleno = 10 (0xa), region = 101 }
 0x1b0   :  { %1064 = vsyncpa [#allocation4], 1 }
 0x1b1   :  { %1066 = vsyncpa [#allocation4 + $0x1], 1 }
 0x1b2   :  { %1067 = vsyncpa [#allocation7], 1 }
 0x1b3   :  { %1068 = vsyncpa [#allocation5], 1 }
 0x1b4   :  { %1070 = vsyncpa [#allocation5 + $0x1], 1 }

</bundles_post_ra>
